<compile_context>
chip_gen: v7x
topology: tpu7x:2x2x1
jax: 0.10.0
libtpu: 0.0.40
codegen_flags: <defaults>
</compile_context>

<pallas_src>
import math
import functools

import jax
import jax.numpy as jnp
from jax import lax
from jax.experimental import pallas as pl
from jax.experimental.pallas import tpu as pltpu

_EPS_SQ = 1e-24  # (F.normalize eps = 1e-12) squared


# ----------------------------------------------------------------------------
# Instance (NT-Xent) loss: flash-style tiled online logsumexp.
# ----------------------------------------------------------------------------
def _instance_kernel(q_ref, k_ref, part_ref, out_ref,
                     qn_scr, m_scr, l_scr, *, inv_temp):
    ci = pl.program_id(1)
    nc = pl.num_programs(1)

    @pl.when(ci == 0)
    def _():
        # Normalize + fold 1/temperature into the row operand ONCE per row
        # tile; cache in VMEM scratch for all column steps.
        q = q_ref[...].astype(jnp.float32)                   # (T, d) row tile
        qn_scr[...] = q * (lax.rsqrt(
            jnp.maximum(jnp.sum(q * q, axis=-1, keepdims=True), _EPS_SQ))
            * inv_temp)
        m_scr[...] = jnp.full(m_scr.shape, -jnp.inf, jnp.float32)
        l_scr[...] = jnp.zeros(l_scr.shape, jnp.float32)

    qn = qn_scr[...]                                         # (T, d), scaled
    k = k_ref[...].astype(jnp.float32)                       # (T, d) col tile
    kn = k * lax.rsqrt(jnp.maximum(jnp.sum(k * k, axis=-1, keepdims=True),
                                   _EPS_SQ))

    # s = (zn @ zn.T) / temperature for this (row, col) tile (MXU, f32 acc).
    s = lax.dot_general(qn, kn, (((1,), (1,)), ((), ())),
                        preferred_element_type=jnp.float32)  # (T, T)

    m_prev = m_scr[...]
    m_new = jnp.maximum(m_prev, jnp.max(s, axis=-1, keepdims=True))
    alpha = jnp.exp(m_prev - m_new)
    l_scr[...] = alpha * l_scr[...] + jnp.sum(jnp.exp(s - m_new), axis=-1,
                                              keepdims=True)
    m_scr[...] = m_new

    @pl.when(ci == nc - 1)
    def _():
        # Positives: row-wise dot against the partner rows (O(T*d)); the
        # 1/temperature factor is already folded into qn.
        p = part_ref[...].astype(jnp.float32)
        pn = p * lax.rsqrt(jnp.maximum(jnp.sum(p * p, axis=-1, keepdims=True),
                                       _EPS_SQ))
        pos = jnp.sum(qn * pn, axis=-1, keepdims=True)        # (T, 1)
        m_f = m_scr[...]
        # Remove the self-similarity diagonal, which equals 1/temperature.
        l_f = l_scr[...] - jnp.exp(inv_temp - m_f)
        loss_rows = m_f + jnp.log(l_f) - pos
        out_ref[...] = jnp.broadcast_to(jnp.sum(loss_rows), out_ref.shape)


def _pick_tile(bs, d):
    # Largest tile that divides bs, is a multiple of 8, and keeps the live
    # footprint well under the v7x 64 MiB physical / 32 MiB scoped VMEM.
    budget = 20 * 1024 * 1024
    for t in (512, 256, 128, 64, 32, 16, 8):
        if bs % t:
            continue
        # 3 double-buffered (t, d) streams + qn scratch + (t, t) similarity.
        live = 3 * 2 * t * d * 4 + t * d * 4 + 2 * t * t * 4
        if live <= budget:
            return t
    return None


def _instance_loss(z1, z2, temperature):
    bs, d = z1.shape
    t = _pick_tile(bs, d)
    # TODO(synk): pad / single-block fallback for batch sizes not a multiple of 8.
    assert t is not None, "instance loss kernel requires batch % 8 == 0"
    inv_temp = float(1.0 / temperature)

    z = jnp.concatenate([z1, z2], axis=0)                     # (2*bs, d)
    nr = (2 * bs) // t                                        # row (= col) tiles
    half = bs // t                                            # block offset to partner

    partials = pl.pallas_call(
        functools.partial(_instance_kernel, inv_temp=inv_temp),
        out_shape=jax.ShapeDtypeStruct((nr, 1, 128), jnp.float32),
        grid=(nr, nr),
        in_specs=[
            pl.BlockSpec((t, d), lambda ri, ci: (ri, 0)),                  # row tile
            pl.BlockSpec((t, d), lambda ri, ci: (ci, 0)),                  # col tile
            pl.BlockSpec((t, d), lambda ri, ci: ((ri + half) % nr, 0)),    # partner rows
        ],
        out_specs=pl.BlockSpec((1, 1, 128), lambda ri, ci: (ri, 0, 0)),
        scratch_shapes=[pltpu.VMEM((t, d), jnp.float32),      # cached scaled row tile
                        pltpu.VMEM((t, 1), jnp.float32),      # running max
                        pltpu.VMEM((t, 1), jnp.float32)],     # running sum
        compiler_params=pltpu.CompilerParams(
            dimension_semantics=("parallel", "arbitrary"),
            vmem_limit_bytes=32 * 1024 * 1024),
    )(z, z, z)
    return jnp.sum(partials[:, 0, 0]) / (2.0 * bs)


# ----------------------------------------------------------------------------
# Cluster loss: one grid step per head, 2x2 block grams, no concat.
# ----------------------------------------------------------------------------
def _cluster_kernel(p1_ref, p2_ref, ce_ref, ne_ref):
    c = p1_ref.shape[-1]
    log_c = math.log(c)
    p1 = p1_ref[0].astype(jnp.float32)                        # (bs, c)
    p2 = p2_ref[0].astype(jnp.float32)

    cdims = (((0,), (0,)), ((), ()))                          # contract over batch
    g11 = lax.dot_general(p1, p1, cdims, preferred_element_type=jnp.float32)
    g12 = lax.dot_general(p1, p2, cdims, preferred_element_type=jnp.float32)
    g21 = lax.dot_general(p2, p1, cdims, preferred_element_type=jnp.float32)
    g22 = lax.dot_general(p2, p2, cdims, preferred_element_type=jnp.float32)

    eye = (lax.broadcasted_iota(jnp.int32, (c, c), 0)
           == lax.broadcasted_iota(jnp.int32, (c, c), 1))
    zero = jnp.float32(0.0)
    d11 = jnp.where(eye, g11, zero)
    d22 = jnp.where(eye, g22, zero)
    # Column norms straight from the gram diagonals (no batch-axis pass).
    inv1r = lax.rsqrt(jnp.maximum(jnp.sum(d11, axis=1, keepdims=True), _EPS_SQ))
    inv1c = lax.rsqrt(jnp.maximum(jnp.sum(d11, axis=0, keepdims=True), _EPS_SQ))
    inv2r = lax.rsqrt(jnp.maximum(jnp.sum(d22, axis=1, keepdims=True), _EPS_SQ))
    inv2c = lax.rsqrt(jnp.maximum(jnp.sum(d22, axis=0, keepdims=True), _EPS_SQ))

    a = g11 * inv1r * inv1c      # view1 x view1
    b = g12 * inv1r * inv2c      # view1 x view2  (positives on its diagonal)
    bt = g21 * inv2r * inv1c     # view2 x view1
    cc = g22 * inv2r * inv2c     # view2 x view2

    pos = jnp.sum(jnp.where(eye, b, zero), axis=1, keepdims=True)   # (c, 1)

    # Rows 0..c-1: logits = row of [a | b] with the self-sim diag (== 1) removed.
    m1 = jnp.maximum(jnp.max(a, axis=1, keepdims=True),
                     jnp.max(b, axis=1, keepdims=True))
    l1 = (jnp.sum(jnp.exp(a - m1), axis=1, keepdims=True)
          + jnp.sum(jnp.exp(b - m1), axis=1, keepdims=True)
          - jnp.exp(1.0 - m1))
    lse1 = m1 + jnp.log(l1)
    # Rows c..2c-1: logits = row of [bt | cc] with the self-sim diag removed.
    m2 = jnp.maximum(jnp.max(bt, axis=1, keepdims=True),
                     jnp.max(cc, axis=1, keepdims=True))
    l2 = (jnp.sum(jnp.exp(bt - m2), axis=1, keepdims=True)
          + jnp.sum(jnp.exp(cc - m2), axis=1, keepdims=True)
          - jnp.exp(1.0 - m2))
    lse2 = m2 + jnp.log(l2)

    ce = (jnp.sum(lse1 - pos) + jnp.sum(lse2 - pos)) / (2.0 * c)
    ce_ref[...] = jnp.broadcast_to(ce, ce_ref.shape)

    # Cluster-usage entropy regularizer (matches torch, incl. 0*log0 -> NaN).
    s1 = jnp.sum(p1, axis=0, keepdims=True)
    pi = s1 / jnp.sum(s1)
    s2 = jnp.sum(p2, axis=0, keepdims=True)
    pj = s2 / jnp.sum(s2)
    ne = ((log_c + jnp.sum(pi * jnp.log(pi)))
          + (log_c + jnp.sum(pj * jnp.log(pj))))
    ne_ref[...] = jnp.broadcast_to(ne, ne_ref.shape)


def _cluster_loss(p1, p2):
    k, bs, c = p1.shape
    ce_pad, ne_pad = pl.pallas_call(
        _cluster_kernel,
        out_shape=(jax.ShapeDtypeStruct((k, 1, 128), jnp.float32),
                   jax.ShapeDtypeStruct((k, 1, 128), jnp.float32)),
        grid=(k,),
        in_specs=[pl.BlockSpec((1, bs, c), lambda kk: (kk, 0, 0)),
                  pl.BlockSpec((1, bs, c), lambda kk: (kk, 0, 0))],
        out_specs=(pl.BlockSpec((1, 1, 128), lambda kk: (kk, 0, 0)),
                   pl.BlockSpec((1, 1, 128), lambda kk: (kk, 0, 0))),
        compiler_params=pltpu.CompilerParams(
            dimension_semantics=("parallel",)),
    )(p1, p2)
    return ce_pad[:, 0, 0], ne_pad[:, 0, 0]


# ----------------------------------------------------------------------------
# Wrapper (glue only: unsqueeze / list packaging).
# ----------------------------------------------------------------------------
def cc_loss(p1, p2, z1, z2, temperature=0.5):
    if p1.ndim == 2:
        p1 = p1[None]
    if p2.ndim == 2:
        p2 = p2[None]
    k = p1.shape[0]

    ce, ne = _cluster_loss(p1, p2)
    loss_cc = _instance_loss(z1, z2, temperature)

    loss_ce = [ce[i] for i in range(k)]
    loss_ne = [ne[i] for i in range(k)]
    return loss_ce, loss_ne, loss_cc


# ----------------------------------------------------------------------------
# Pure-JAX reference (for a silent sanity check).
# ----------------------------------------------------------------------------
def _ref_cc_loss(p1, p2, z1, z2, temperature=0.5):
    bs = z1.shape[0]
    z = jnp.concatenate([z1, z2], axis=0)
    z = z / jnp.maximum(jnp.linalg.norm(z, axis=-1, keepdims=True), 1e-12)
    s = (z @ z.T) / temperature
    n2 = 2 * bs
    idx = jnp.arange(n2)
    pos = s[idx, jnp.where(idx < bs, idx + bs, idx - bs)]
    masked = jnp.where(jnp.eye(n2, dtype=bool), -jnp.inf, s)
    loss_cc = jnp.mean(jax.scipy.special.logsumexp(masked, axis=-1) - pos)

    k, _, c = p1.shape
    loss_ce, loss_ne = [], []
    for kk in range(k):
        p = jnp.concatenate([p1[kk], p2[kk]], axis=1)
        p = p / jnp.maximum(jnp.linalg.norm(p, axis=0, keepdims=True), 1e-12)
        sc = p.T @ p
        n2c = 2 * c
        idc = jnp.arange(n2c)
        posc = sc[idc, jnp.where(idc < c, idc + c, idc - c)]
        maskedc = jnp.where(jnp.eye(n2c, dtype=bool), -jnp.inf, sc)
        loss_ce.append(jnp.mean(
            jax.scipy.special.logsumexp(maskedc, axis=-1) - posc))
        pi = p1[kk].sum(0); pi = pi / pi.sum()
        pj = p2[kk].sum(0); pj = pj / pj.sum()
        loss_ne.append(math.log(c) + (pi * jnp.log(pi)).sum()
                       + math.log(c) + (pj * jnp.log(pj)).sum())
    return loss_ce, loss_ne, loss_cc


if __name__ == "__main__":
    key = jax.random.PRNGKey(0)
    k1, k2, k3, k4 = jax.random.split(key, 4)

    bs, d = 8, 32        # instance features
    kheads, c = 2, 8     # cluster heads / clusters

    z1 = jax.random.normal(k1, (bs, d), dtype=jnp.float32)
    z2 = jax.random.normal(k2, (bs, d), dtype=jnp.float32)
    p1 = jax.nn.softmax(jax.random.normal(k3, (kheads, bs, c),
                                          dtype=jnp.float32), axis=-1)
    p2 = jax.nn.softmax(jax.random.normal(k4, (kheads, bs, c),
                                          dtype=jnp.float32), axis=-1)

    loss_ce, loss_ne, loss_cc = cc_loss(p1, p2, z1, z2, temperature=0.5)
    jax.block_until_ready((loss_ce, loss_ne, loss_cc))

    # silent numerical sanity check against a pure-JAX reference
    ref_ce, ref_ne, ref_cc = _ref_cc_loss(p1, p2, z1, z2, temperature=0.5)
    import numpy as np
    np.testing.assert_allclose(np.array(loss_cc), np.array(ref_cc),
                               rtol=1e-4, atol=1e-5)
    np.testing.assert_allclose(np.array(loss_ce), np.array(ref_ce),
                               rtol=1e-4, atol=1e-5)
    np.testing.assert_allclose(np.array(loss_ne), np.array(ref_ne),
                               rtol=1e-4, atol=1e-5)

    print("KERNEL_OK")
</pallas_src>

<mosaic_0001>
module attributes {stable_mosaic.version = 11 : i64} {
  func.func @_cluster_kernel(%arg0: i32, %arg1: memref<1x8x8xf32, #tpu.memory_space<vmem>>, %arg2: memref<1x8x8xf32, #tpu.memory_space<vmem>>, %arg3: memref<1x1x128xf32, #tpu.memory_space<vmem>>, %arg4: memref<1x1x128xf32, #tpu.memory_space<vmem>>) attributes {dimension_semantics = [#tpu.dimension_semantics<parallel>], iteration_bounds = array<i64: 2>, scalar_prefetch = 0 : i64, scratch_operands = 0 : i64, tpu.core_type = #tpu.core_type<tc>, window_params = [{transform_indices = @transform_0, window_bounds = array<i64: 1, 8, 8>}, {transform_indices = @transform_1, window_bounds = array<i64: 1, 8, 8>}, {transform_indices = @transform_2, window_bounds = array<i64: 1, 1, 128>}, {transform_indices = @transform_3, window_bounds = array<i64: 1, 1, 128>}]} {
    %c0 = arith.constant 0 : index
    %c0_0 = arith.constant 0 : index
    %c0_1 = arith.constant 0 : index
    %0 = vector.load %arg1[%c0, %c0_0, %c0_1] : memref<1x8x8xf32, #tpu.memory_space<vmem>>, vector<1x8x8xf32>
    %1 = vector.shape_cast %0 : vector<1x8x8xf32> to vector<8x8xf32>
    %c0_2 = arith.constant 0 : index
    %c0_3 = arith.constant 0 : index
    %c0_4 = arith.constant 0 : index
    %2 = vector.load %arg2[%c0_2, %c0_3, %c0_4] : memref<1x8x8xf32, #tpu.memory_space<vmem>>, vector<1x8x8xf32>
    %3 = vector.shape_cast %2 : vector<1x8x8xf32> to vector<8x8xf32>
    %cst = arith.constant dense<0.000000e+00> : vector<8x8xf32>
    %4 = tpu.matmul %1, %1, %cst {dimension_numbers = #tpu.dot_dimension_numbers<[0], [0], [1], [1], [0, 1, 1, 1], [], []>} : vector<8x8xf32>, vector<8x8xf32>, vector<8x8xf32> -> vector<8x8xf32>
    %cst_5 = arith.constant dense<0.000000e+00> : vector<8x8xf32>
    %5 = tpu.matmul %1, %3, %cst_5 {dimension_numbers = #tpu.dot_dimension_numbers<[0], [0], [1], [1], [0, 1, 1, 1], [], []>} : vector<8x8xf32>, vector<8x8xf32>, vector<8x8xf32> -> vector<8x8xf32>
    %cst_6 = arith.constant dense<0.000000e+00> : vector<8x8xf32>
    %6 = tpu.matmul %3, %1, %cst_6 {dimension_numbers = #tpu.dot_dimension_numbers<[0], [0], [1], [1], [0, 1, 1, 1], [], []>} : vector<8x8xf32>, vector<8x8xf32>, vector<8x8xf32> -> vector<8x8xf32>
    %cst_7 = arith.constant dense<0.000000e+00> : vector<8x8xf32>
    %7 = tpu.matmul %3, %3, %cst_7 {dimension_numbers = #tpu.dot_dimension_numbers<[0], [0], [1], [1], [0, 1, 1, 1], [], []>} : vector<8x8xf32>, vector<8x8xf32>, vector<8x8xf32> -> vector<8x8xf32>
    %8 = tpu.iota {dimensions = array<i32: 0>} : vector<8x8xi32>
    %9 = tpu.iota {dimensions = array<i32: 1>} : vector<8x8xi32>
    %10 = arith.cmpi eq, %8, %9 : vector<8x8xi32>
    %cst_8 = arith.constant 0.000000e+00 : f32
    %11 = vector.broadcast %cst_8 : f32 to vector<8x8xf32>
    %12 = arith.select %10, %4, %11 : vector<8x8xi1>, vector<8x8xf32>
    %cst_9 = arith.constant 0.000000e+00 : f32
    %13 = vector.broadcast %cst_9 : f32 to vector<8x8xf32>
    %14 = arith.select %10, %7, %13 : vector<8x8xi1>, vector<8x8xf32>
    %cst_10 = arith.constant dense<0.000000e+00> : vector<8xf32>
    %15 = vector.multi_reduction <add>, %12, %cst_10 [1] : vector<8x8xf32> to vector<8xf32>
    %16 = vector.shape_cast %15 : vector<8xf32> to vector<8x1xf32>
    %cst_11 = arith.constant 1.000000e-24 : f32
    %17 = vector.broadcast %cst_11 : f32 to vector<8x1xf32>
    %18 = arith.maximumf %16, %17 : vector<8x1xf32>
    %19 = math.rsqrt %18 : vector<8x1xf32>
    %cst_12 = arith.constant dense<0.000000e+00> : vector<8xf32>
    %20 = vector.multi_reduction <add>, %12, %cst_12 [0] : vector<8x8xf32> to vector<8xf32>
    %21 = vector.shape_cast %20 : vector<8xf32> to vector<1x8xf32>
    %cst_13 = arith.constant 1.000000e-24 : f32
    %22 = vector.broadcast %cst_13 : f32 to vector<1x8xf32>
    %23 = arith.maximumf %21, %22 : vector<1x8xf32>
    %24 = math.rsqrt %23 : vector<1x8xf32>
    %cst_14 = arith.constant dense<0.000000e+00> : vector<8xf32>
    %25 = vector.multi_reduction <add>, %14, %cst_14 [1] : vector<8x8xf32> to vector<8xf32>
    %26 = vector.shape_cast %25 : vector<8xf32> to vector<8x1xf32>
    %cst_15 = arith.constant 1.000000e-24 : f32
    %27 = vector.broadcast %cst_15 : f32 to vector<8x1xf32>
    %28 = arith.maximumf %26, %27 : vector<8x1xf32>
    %29 = math.rsqrt %28 : vector<8x1xf32>
    %cst_16 = arith.constant dense<0.000000e+00> : vector<8xf32>
    %30 = vector.multi_reduction <add>, %14, %cst_16 [0] : vector<8x8xf32> to vector<8xf32>
    %31 = vector.shape_cast %30 : vector<8xf32> to vector<1x8xf32>
    %cst_17 = arith.constant 1.000000e-24 : f32
    %32 = vector.broadcast %cst_17 : f32 to vector<1x8xf32>
    %33 = arith.maximumf %31, %32 : vector<1x8xf32>
    %34 = math.rsqrt %33 : vector<1x8xf32>
    %35 = vector.broadcast %19 : vector<8x1xf32> to vector<8x8xf32>
    %36 = arith.mulf %4, %35 : vector<8x8xf32>
    %37 = vector.broadcast %24 : vector<1x8xf32> to vector<8x8xf32>
    %38 = arith.mulf %36, %37 : vector<8x8xf32>
    %39 = vector.broadcast %19 : vector<8x1xf32> to vector<8x8xf32>
    %40 = arith.mulf %5, %39 : vector<8x8xf32>
    %41 = vector.broadcast %34 : vector<1x8xf32> to vector<8x8xf32>
    %42 = arith.mulf %40, %41 : vector<8x8xf32>
    %43 = vector.broadcast %29 : vector<8x1xf32> to vector<8x8xf32>
    %44 = arith.mulf %6, %43 : vector<8x8xf32>
    %45 = vector.broadcast %24 : vector<1x8xf32> to vector<8x8xf32>
    %46 = arith.mulf %44, %45 : vector<8x8xf32>
    %47 = vector.broadcast %29 : vector<8x1xf32> to vector<8x8xf32>
    %48 = arith.mulf %7, %47 : vector<8x8xf32>
    %49 = vector.broadcast %34 : vector<1x8xf32> to vector<8x8xf32>
    %50 = arith.mulf %48, %49 : vector<8x8xf32>
    %cst_18 = arith.constant 0.000000e+00 : f32
    %51 = vector.broadcast %cst_18 : f32 to vector<8x8xf32>
    %52 = arith.select %10, %42, %51 : vector<8x8xi1>, vector<8x8xf32>
    %cst_19 = arith.constant dense<0.000000e+00> : vector<8xf32>
    %53 = vector.multi_reduction <add>, %52, %cst_19 [1] : vector<8x8xf32> to vector<8xf32>
    %54 = vector.shape_cast %53 : vector<8xf32> to vector<8x1xf32>
    %cst_20 = arith.constant dense<0xFF800000> : vector<8xf32>
    %55 = vector.multi_reduction <maximumf>, %38, %cst_20 [1] : vector<8x8xf32> to vector<8xf32>
    %56 = vector.shape_cast %55 : vector<8xf32> to vector<8x1xf32>
    %cst_21 = arith.constant dense<0xFF800000> : vector<8xf32>
    %57 = vector.multi_reduction <maximumf>, %42, %cst_21 [1] : vector<8x8xf32> to vector<8xf32>
    %58 = vector.shape_cast %57 : vector<8xf32> to vector<8x1xf32>
    %59 = arith.maximumf %56, %58 : vector<8x1xf32>
    %60 = vector.broadcast %59 : vector<8x1xf32> to vector<8x8xf32>
    %61 = arith.subf %38, %60 : vector<8x8xf32>
    %62 = math.exp %61 : vector<8x8xf32>
    %cst_22 = arith.constant dense<0.000000e+00> : vector<8xf32>
    %63 = vector.multi_reduction <add>, %62, %cst_22 [1] : vector<8x8xf32> to vector<8xf32>
    %64 = vector.shape_cast %63 : vector<8xf32> to vector<8x1xf32>
    %65 = vector.broadcast %59 : vector<8x1xf32> to vector<8x8xf32>
    %66 = arith.subf %42, %65 : vector<8x8xf32>
    %67 = math.exp %66 : vector<8x8xf32>
    %cst_23 = arith.constant dense<0.000000e+00> : vector<8xf32>
    %68 = vector.multi_reduction <add>, %67, %cst_23 [1] : vector<8x8xf32> to vector<8xf32>
    %69 = vector.shape_cast %68 : vector<8xf32> to vector<8x1xf32>
    %70 = arith.addf %64, %69 : vector<8x1xf32>
    %cst_24 = arith.constant 1.000000e+00 : f32
    %71 = vector.broadcast %cst_24 : f32 to vector<8x1xf32>
    %72 = arith.subf %71, %59 : vector<8x1xf32>
    %73 = math.exp %72 : vector<8x1xf32>
    %74 = arith.subf %70, %73 : vector<8x1xf32>
    %75 = math.log %74 : vector<8x1xf32>
    %76 = arith.addf %59, %75 : vector<8x1xf32>
    %cst_25 = arith.constant dense<0xFF800000> : vector<8xf32>
    %77 = vector.multi_reduction <maximumf>, %46, %cst_25 [1] : vector<8x8xf32> to vector<8xf32>
    %78 = vector.shape_cast %77 : vector<8xf32> to vector<8x1xf32>
    %cst_26 = arith.constant dense<0xFF800000> : vector<8xf32>
    %79 = vector.multi_reduction <maximumf>, %50, %cst_26 [1] : vector<8x8xf32> to vector<8xf32>
    %80 = vector.shape_cast %79 : vector<8xf32> to vector<8x1xf32>
    %81 = arith.maximumf %78, %80 : vector<8x1xf32>
    %82 = vector.broadcast %81 : vector<8x1xf32> to vector<8x8xf32>
    %83 = arith.subf %46, %82 : vector<8x8xf32>
    %84 = math.exp %83 : vector<8x8xf32>
    %cst_27 = arith.constant dense<0.000000e+00> : vector<8xf32>
    %85 = vector.multi_reduction <add>, %84, %cst_27 [1] : vector<8x8xf32> to vector<8xf32>
    %86 = vector.shape_cast %85 : vector<8xf32> to vector<8x1xf32>
    %87 = vector.broadcast %81 : vector<8x1xf32> to vector<8x8xf32>
    %88 = arith.subf %50, %87 : vector<8x8xf32>
    %89 = math.exp %88 : vector<8x8xf32>
    %cst_28 = arith.constant dense<0.000000e+00> : vector<8xf32>
    %90 = vector.multi_reduction <add>, %89, %cst_28 [1] : vector<8x8xf32> to vector<8xf32>
    %91 = vector.shape_cast %90 : vector<8xf32> to vector<8x1xf32>
    %92 = arith.addf %86, %91 : vector<8x1xf32>
    %cst_29 = arith.constant 1.000000e+00 : f32
    %93 = vector.broadcast %cst_29 : f32 to vector<8x1xf32>
    %94 = arith.subf %93, %81 : vector<8x1xf32>
    %95 = math.exp %94 : vector<8x1xf32>
    %96 = arith.subf %92, %95 : vector<8x1xf32>
    %97 = math.log %96 : vector<8x1xf32>
    %98 = arith.addf %81, %97 : vector<8x1xf32>
    %99 = arith.subf %76, %54 : vector<8x1xf32>
    %100 = vector.shape_cast %99 : vector<8x1xf32> to vector<1x8x1xf32>
    %cst_30 = arith.constant dense<0.000000e+00> : vector<1xf32>
    %101 = vector.multi_reduction <add>, %100, %cst_30 [1, 2] : vector<1x8x1xf32> to vector<1xf32>
    %102 = vector.shape_cast %101 : vector<1xf32> to vector<1x1x1xf32>
    %103 = vector.extract %102[0, 0, 0] : f32 from vector<1x1x1xf32>
    %104 = arith.subf %98, %54 : vector<8x1xf32>
    %105 = vector.shape_cast %104 : vector<8x1xf32> to vector<1x8x1xf32>
    %cst_31 = arith.constant dense<0.000000e+00> : vector<1xf32>
    %106 = vector.multi_reduction <add>, %105, %cst_31 [1, 2] : vector<1x8x1xf32> to vector<1xf32>
    %107 = vector.shape_cast %106 : vector<1xf32> to vector<1x1x1xf32>
    %108 = vector.extract %107[0, 0, 0] : f32 from vector<1x1x1xf32>
    %109 = arith.addf %103, %108 : f32
    %cst_32 = arith.constant 1.600000e+01 : f32
    %110 = arith.divf %109, %cst_32 : f32
    %111 = vector.broadcast %110 : f32 to vector<1x1x128xf32>
    %c0_33 = arith.constant 0 : index
    %c0_34 = arith.constant 0 : index
    %c0_35 = arith.constant 0 : index
    %112 = vector.load %arg3[%c0_33, %c0_34, %c0_35] : memref<1x1x128xf32, #tpu.memory_space<vmem>>, vector<1x1x128xf32>
    tpu.vector_store %arg3[%c0_33, %c0_34, %c0_35], %111 {strides = array<i32>} : memref<1x1x128xf32, #tpu.memory_space<vmem>>, vector<1x1x128xf32>,
    %cst_36 = arith.constant dense<0.000000e+00> : vector<8xf32>
    %113 = vector.multi_reduction <add>, %1, %cst_36 [0] : vector<8x8xf32> to vector<8xf32>
    %114 = vector.shape_cast %113 : vector<8xf32> to vector<1x8xf32>
    %115 = vector.shape_cast %114 : vector<1x8xf32> to vector<1x1x8xf32>
    %cst_37 = arith.constant dense<0.000000e+00> : vector<1xf32>
    %116 = vector.multi_reduction <add>, %115, %cst_37 [1, 2] : vector<1x1x8xf32> to vector<1xf32>
    %117 = vector.shape_cast %116 : vector<1xf32> to vector<1x1x1xf32>
    %118 = vector.extract %117[0, 0, 0] : f32 from vector<1x1x1xf32>
    %119 = vector.broadcast %118 : f32 to vector<1x8xf32>
    %120 = arith.divf %114, %119 : vector<1x8xf32>
    %cst_38 = arith.constant dense<0.000000e+00> : vector<8xf32>
    %121 = vector.multi_reduction <add>, %3, %cst_38 [0] : vector<8x8xf32> to vector<8xf32>
    %122 = vector.shape_cast %121 : vector<8xf32> to vector<1x8xf32>
    %123 = vector.shape_cast %122 : vector<1x8xf32> to vector<1x1x8xf32>
    %cst_39 = arith.constant dense<0.000000e+00> : vector<1xf32>
    %124 = vector.multi_reduction <add>, %123, %cst_39 [1, 2] : vector<1x1x8xf32> to vector<1xf32>
    %125 = vector.shape_cast %124 : vector<1xf32> to vector<1x1x1xf32>
    %126 = vector.extract %125[0, 0, 0] : f32 from vector<1x1x1xf32>
    %127 = vector.broadcast %126 : f32 to vector<1x8xf32>
    %128 = arith.divf %122, %127 : vector<1x8xf32>
    %129 = math.log %120 : vector<1x8xf32>
    %130 = arith.mulf %120, %129 : vector<1x8xf32>
    %131 = vector.shape_cast %130 : vector<1x8xf32> to vector<1x1x8xf32>
    %cst_40 = arith.constant dense<0.000000e+00> : vector<1xf32>
    %132 = vector.multi_reduction <add>, %131, %cst_40 [1, 2] : vector<1x1x8xf32> to vector<1xf32>
    %133 = vector.shape_cast %132 : vector<1xf32> to vector<1x1x1xf32>
    %134 = vector.extract %133[0, 0, 0] : f32 from vector<1x1x1xf32>
    %cst_41 = arith.constant 2.07944155 : f32
    %135 = arith.addf %cst_41, %134 : f32
    %136 = math.log %128 : vector<1x8xf32>
    %137 = arith.mulf %128, %136 : vector<1x8xf32>
    %138 = vector.shape_cast %137 : vector<1x8xf32> to vector<1x1x8xf32>
    %cst_42 = arith.constant dense<0.000000e+00> : vector<1xf32>
    %139 = vector.multi_reduction <add>, %138, %cst_42 [1, 2] : vector<1x1x8xf32> to vector<1xf32>
    %140 = vector.shape_cast %139 : vector<1xf32> to vector<1x1x1xf32>
    %141 = vector.extract %140[0, 0, 0] : f32 from vector<1x1x1xf32>
    %cst_43 = arith.constant 2.07944155 : f32
    %142 = arith.addf %cst_43, %141 : f32
    %143 = arith.addf %135, %142 : f32
    %144 = vector.broadcast %143 : f32 to vector<1x1x128xf32>
    %c0_44 = arith.constant 0 : index
    %c0_45 = arith.constant 0 : index
    %c0_46 = arith.constant 0 : index
    %145 = vector.load %arg4[%c0_44, %c0_45, %c0_46] : memref<1x1x128xf32, #tpu.memory_space<vmem>>, vector<1x1x128xf32>
    tpu.vector_store %arg4[%c0_44, %c0_45, %c0_46], %144 {strides = array<i32>} : memref<1x1x128xf32, #tpu.memory_space<vmem>>, vector<1x1x128xf32>,
    return
  }
  func.func @transform_0(%arg0: i32) -> (i32, i32, i32) {
    %c0_i32 = arith.constant 0 : i32
    %c0_i32_0 = arith.constant 0 : i32
    %c0_i32_1 = arith.constant 0 : i32
    return %arg0, %c0_i32, %c0_i32_0 : i32, i32, i32
  }
  func.func @transform_1(%arg0: i32) -> (i32, i32, i32) {
    %c0_i32 = arith.constant 0 : i32
    %c0_i32_0 = arith.constant 0 : i32
    %c0_i32_1 = arith.constant 0 : i32
    return %arg0, %c0_i32, %c0_i32_0 : i32, i32, i32
  }
  func.func @transform_2(%arg0: i32) -> (i32, i32, i32) {
    %c0_i32 = arith.constant 0 : i32
    %c0_i32_0 = arith.constant 0 : i32
    %c0_i32_1 = arith.constant 0 : i32
    return %arg0, %c0_i32, %c0_i32_0 : i32, i32, i32
  }
  func.func @transform_3(%arg0: i32) -> (i32, i32, i32) {
    %c0_i32 = arith.constant 0 : i32
    %c0_i32_0 = arith.constant 0 : i32
    %c0_i32_1 = arith.constant 0 : i32
    return %arg0, %c0_i32, %c0_i32_0 : i32, i32, i32
  }
}

</mosaic_0001>

<bundles_post_ra>
// kernel: tpu_custom_call.1
= control target key start
LH: loop header
LB: loop body
LE: loop exit
PB: predicated region body
PF: predicated region fallthrough
CT: control target
= control target key end

     0   :  { %9 = vsyncpa [#allocation3], 0  ;;  %s1576_s0 = inlined_call_operand.hbm [shape: f32[2,8,8], index: 0, kind: input, shape index: {}]   ;;  %s1577_s1 = inlined_call_operand.hbm [shape: f32[2,8,8], index: 1, kind: input, shape index: {}]   ;;  %s1578_s2 = inlined_call_operand.hbm [shape: f32[2,1,128], index: 2, kind: output, shape index: {0}]   ;;  %s1579_s3 = inlined_call_operand.hbm [shape: f32[2,1,128], index: 3, kind: output, shape index: {1}]  }
   0x1   :  { %11 = vsyncpa [#allocation3 + $0x1], 0 }
   0x2   :  { %12 = vsyncpa [#allocation6], 0 }
   0x3   :  { %14 = vsyncpa [#allocation6 + $0x1], 0 }
   0x4   :  { %15 = vsyncpa [#allocation4], 0 }
   0x5   :  { %17 = vsyncpa [#allocation4 + $0x1], 0 }
   0x6   :  { %18 = vsyncpa [#allocation9], 0 }
   0x7   :  { %20 = vsyncpa [#allocation9 + $0x1], 0  ;;  %s1270_s12 = smov 0   ;;  %s1272_s13 = smov 0  }
   0x8   :  { %s1274_s14 = smov 0   ;;  %s1276_s15 = smov 0  }
   0x9 LB: > { %s1291_s16 = sadd.s32 4294967295, %s1242_s15   ;;  %s932_s17 = sadd.s32 4294967294, %s1242_s15   ;;  %s1242_s15 = sphi %s1276_s15, %s1598_s15   ;;  %s1238_s14 = sphi %s1274_s14, %s1597_s14   ;;  %s1234_s13 = sphi %s1272_s13, %s1596_s13   ;;  %s1230_s12 = sphi %s1270_s12, %s1595_s12  }
   0xa   : > { %s1295_s18 = sadd.s32 1, %s1242_s15   ;;  %s33_s19 = sadd.s32 1, %s1238_s14 }
   0xb   : > { %s30_s20 = ssub.s32 %s1242_s15, %s1295_s18  ;;  %p40_p0 = scmp.ne.s32.totalorder %s1238_s14, %s1234_s13 }
   0xc   : > { %p31_p1 = scmp.eq.s32.totalorder %s30_s20, 0  ;;  %p41_p2 = scmp.eq.s32.totalorder %s1242_s15, 0 }
   0xd   : > { %p46_p3 = scmp.ne.s32.totalorder %s1234_s13, %s1230_s12  ;;  %p47_p4 = scmp.eq.s32.totalorder %s1291_s16, 0 }
   0xe   : > { %s1307_s21 = scalar_select %p31_p1, %s1238_s14, %s33_s19  }
   0xf   : > { %p1309_p5 = por %p41_p2, %p40_p0  ;;  %p1313_p6 = por %p47_p4, %p46_p3 }
  0x10   : > { %p96_p7 = scmp.eq.s32.totalorder %s1291_s16, 1  ;;  %p102_p8 = scmp.eq.s32.totalorder %s932_s17, 1 }
  0x11   : > { %s1583_s23 = scalar_select %p1313_p6, 1, 0 }
  0x12   : > { %p1012_p10 = scmp.lt.s32.totalorder %s1242_s15, 2  ;;  %p1320_p11 = por %p96_p7, %p40_p0 }
  0x13   : > { %p1324_p12 = por %p102_p8, %p46_p3  ;;  %s1329_s26 = sand.u32 1, %s1238_s14  }
  0x14   : > { %s1584_s24 = scalar_select %p1320_p11, 1, 0 }
  0x15   : > { %s1585_s25 = scalar_select %p1324_p12, 1, 0 }
  0x16   : > { %s936_s27 = sshll.u32 %s1242_s15, 7  ;;  %s935_s28 = sshll.u32 %s1329_s26, 3 }
  0x17   : > { %s1338_s4 = scalar_lea.hbm %s1576_s0, %s936_s27  ;;  %s152_s5 = scalar_lea.vmem [#allocation2], %s935_s28 }
  0x18   : > { %s159_s6 = sshll.u32 %s152_s5, 4  ;;  %p1344_p13 = pnand %p1012_p10, %p1309_p5  ;;  %s1348_s6 = int_to_ptr.vmem [resolvable:$true] %s159_s6 }
  0x19   : > { %s149_s8 = scalar_lea.sflag [#allocation3], %s1329_s26  ;;  %s1080_s9 = scalar_lea.hbm %s1338_s4, 128 }
  0x1a   : > { %p1081_p2 = scmp.ne.s32.totalorder %s1338_s4, %s1080_s9  ;;  %p1082_p3 = pneg %p1344_p13 }
  0x1b   : > { %s1085_s17 = scalar_lea.hbm %s1576_s0, 256  ;;  %p1086_p5 = scmp.lt.u32.totalorder %s1338_s4, %s1576_s0 }
  0x1c   : > { %p1083_p4 = pnand %p1082_p3, %p1081_p2  ;;  %p1087_p8 = scmp.lt.u32.totalorder %s1085_s17, %s1080_s9 }
  0x1d   : > { %p1089_p9 = scmp.lt.u32.totalorder %s1080_s9, %s1338_s4 }
  0x1e   : > { %p1084_p7 = pneg %p1083_p4  ;;  %p1088_p10 = por %p1087_p8, %p1086_p5 }
  0x20   : > { %p1090_p0 = por %p1089_p9, %p1088_p10 }
  0x22   : > { %p1091_p1 = pnand %p1090_p0, %p1084_p7 }
  0x24   : > { %1094 = shalt.err (!%p1091_p1)
}
  0x25   : > { %s1095_s22 = scalar_lea.vmem %s1348_s6, 128  ;;  %s1244_s29 = smov [#allocation2]  }
  0x26   : > { %p1096_p2 = scmp.ne.s32.totalorder %s1348_s6, %s1095_s22  ;;  %s1100_s30 = sshll.u32 %s1244_s29, 4  ;;  %s1101_s30 = int_to_ptr.vmem [resolvable:$false] %s1100_s30 }
  0x27   : > { %s1102_s5 = scalar_lea.vmem %s1101_s30, 256  ;;  %p1103_p11 = scmp.lt.s32.totalorder %s1348_s6, %s1101_s30 }
  0x28   : > { %p1098_p4 = pnand %p1096_p2, %p1082_p3  ;;  %p1104_p5 = scmp.lt.s32.totalorder %s1102_s5, %s1095_s22 }
  0x2a   : > { %p1099_p12 = pneg %p1098_p4  ;;  %p1105_p8 = por %p1104_p5, %p1103_p11 }
  0x2c   : > { %p1106_p9 = pnand %p1105_p8, %p1099_p12 }
  0x2e   : > { %1109 = shalt.err (!%p1106_p9)
}
  0x2f   : > { %1001 = dma.hbm_to_vmem [thread:$0]  (!%p1344_p13), %s1338_s4, 128, %s1348_s6, %s149_s8  }
  0x30   : > { %p1587_p0 = scmp.lt.s32.totalorder %s1242_s15, 3  ;;  %p1588_p1 = scmp.ge.s32.totalorder %s1242_s15, 1 }
  0x31   : > { %s1391_s17 = scalar_lea.hbm %s1577_s1, %s936_s27  ;;  %s170_s19 = scalar_lea.vmem [#allocation5], %s935_s28 }
  0x32   : > { %p1382_p7 = pnand %p1588_p1, %p1587_p0  ;;  %s177_s20 = sshll.u32 %s170_s19, 4  ;;  %s178_s20 = int_to_ptr.vmem [resolvable:$true] %s177_s20 }
  0x33   : > { %s167_s4 = scalar_lea.sflag [#allocation6], %s1329_s26  ;;  %s1110_s6 = scalar_lea.hbm %s1391_s17, 128 }
  0x34   : > { %s1589_s9 = scalar_select %p1382_p7, 1, 0 }
  0x35   : > { %p1111_p11 = scmp.ne.s32.totalorder %s1391_s17, %s1110_s6  ;;  %s1115_s27 = scalar_lea.hbm %s1577_s1, 256 }
  0x36   : > { %p1116_p2 = scmp.lt.u32.totalorder %s1391_s17, %s1577_s1  ;;  %p1117_p4 = scmp.lt.u32.totalorder %s1115_s27, %s1110_s6 }
  0x37   : > { %p1113_p12 = pnand %p1111_p11, %p1082_p3  ;;  %p1119_p8 = scmp.lt.u32.totalorder %s1110_s6, %s1391_s17 }
  0x38   : > { %p1118_p5 = por %p1117_p4, %p1116_p2 }
  0x39   : > { %p1114_p10 = pneg %p1113_p12 }
  0x3a   : > { %p1120_p9 = por %p1119_p8, %p1118_p5 }
  0x3c   : > { %p1121_p0 = pnand %p1120_p9, %p1114_p10 }
  0x3e   : > { %1124 = shalt.err (!%p1121_p0)
}
  0x3f   : > { %s1125_s26 = scalar_lea.vmem %s178_s20, 128  ;;  %s1245_s28 = smov [#allocation5]  }
  0x40   : > { %p1126_p1 = scmp.ne.s32.totalorder %s178_s20, %s1125_s26  ;;  %s1130_s5 = sshll.u32 %s1245_s28, 4  ;;  %s1131_s5 = int_to_ptr.vmem [resolvable:$false] %s1130_s5 }
  0x41   : > { %s1132_s10 = scalar_lea.vmem %s1131_s5, 256  ;;  %p1133_p6 = scmp.lt.s32.totalorder %s178_s20, %s1131_s5 }
  0x42   : > { %p1128_p11 = pnand %p1126_p1, %p1082_p3  ;;  %p1134_p7 = scmp.lt.s32.totalorder %s1132_s10, %s1125_s26 }
  0x44   : > { %p1129_p12 = pneg %p1128_p11  ;;  %p1135_p2 = por %p1134_p7, %p1133_p6 }
  0x46   : > { %p1136_p4 = pnand %p1135_p2, %p1129_p12 }
  0x48   : > { %1139 = shalt.err (!%p1136_p4)
}
  0x49   : > { %1004 = dma.hbm_to_vmem [thread:$0]  (!%p1344_p13), %s1391_s17, 128, %s178_s20, %s167_s4  }
  0x4a   : > { %p1590_p10 = scmp.ne.s32.totalorder %s1589_s9, 0 }
  0x4b   : > { %s1418_s11 = sand.u32 (!%p1590_p10), 1, %s1234_s13   ;;  %p1591_p3 = scmp.ne.s32.totalorder (!%p1590_p10), %s1583_s23, 0 }
  0x4c   : > { %186 = sbr.rel (%p1590_p10) target bundleno = 1389 (0x56d), region = 28  ;;  %s940_s19 = sshll.u32 (!%p1590_p10), %s1418_s11, 3 }
  0x4d   : > { %s189_s6 = scalar_lea.sflag (!%p1590_p10), [#allocation3], %s1418_s11  ;;  %s192_s8 = scalar_lea.vmem (!%p1590_p10), [#allocation2], %s940_s19 }
  0x53   : > { %1213 = dma.done.wait (%p1591_p3), %s189_s6, 128  }
  0x54   : > { %1215 = vsyncadd (%p1591_p3), %s189_s6, 4294967168  ;;  %s198_s7 = scalar_lea.sflag [#allocation6], %s1418_s11  ;;  %s201_s17 = scalar_lea.vmem [#allocation5], %s940_s19 }
  0x55   : > { %1217 = dma.done.wait (%p1591_p3), %s198_s7, 128  }
  0x56   : > { %1219 = vsyncadd (%p1591_p3), %s198_s7, 4294967168  ;;  %v1246_v0 = vmov 0.0   ;;  %vm1247_vm0 = vmmov 0   ;;  %v1433_v1 = vld [vmem:[%s192_s8] sm:$0xff]  ;;  %v1435_v2 = vld [vmem:[%s201_s17] sm:$0xff]  ;;  %vm266_vm1 = vcmask 64512   ;;  %v585_v5 = vlaneseq }
  0x57   : > { %963 = vmatprep.subr.mxu1 %v1246_v0  ;;  %958 = vmatprep.subr.mxu0 %v1246_v0  ;;  %vm720_vm3 = vcmask 57344   ;;  %vm685_vm4 = vcmask 7168   ;;  %s225_s29 = scalar_lea.vmem [#allocation7], %s1418_s11  ;;  %s946_s30 = sshll.u32 %s1291_s16, 4 }
  0x58   : > { %960 = vmatprep.mubr.msk.f32.mxu0 %vm1247_vm0, %v1246_v0  ;;  %965 = vmatprep.mubr.msk.f32.mxu1 %vm1247_vm0, %v1246_v0  ;;  %v1449_v6 = vshrl.u32 %v585_v5, 7  ;;  %v1451_v7 = vand.u32 127, %v585_v5  ;;  %s1506_s5 = scalar_lea.hbm %s1578_s2, %s946_s30  ;;  %s802_s10 = sshll.u32 %s225_s29, 4  ;;  %s803_s10 = int_to_ptr.vmem [resolvable:$true] %s802_s10 }
  0x59   : > { %234 = vxpose.xlu0.b32.start.end [1/1] (short) (narrow) %v1433_v1, 8  ;;  %964 = vmatpush3.msra.mxu1 %v1435_v2  ;;  %s786_s19 = scalar_lea.sflag [#allocation4], %s1418_s11  ;;  %s1140_s6 = scalar_lea.vmem %s803_s10, 16 }
  0x5a   : > { %973 = vmatprep.subr.mxu1 %v1246_v0  ;;  %959 = vmatpush3.msra.mxu0 %v1433_v1  ;;  %vm589_vm2 = vcmp.eq.s32.totalorder %v1449_v6, %v1451_v7  ;;  %p1141_p6 = scmp.ne.s32.totalorder %s803_s10, %s1140_s6  ;;  %p1592_p13 = scmp.ne.s32.totalorder %s1584_s24, 0 }
  0x5b   : > { %968 = vmatprep.subr.mxu0 %v1246_v0  ;;  %s1248_s8 = smov [#allocation7]  }
  0x5c   : > { %p1142_p7 = pnand %p1141_p6, %p1592_p13  ;;  %s1144_s7 = sshll.u32 %s1248_s8, 4  ;;  %s1145_s7 = int_to_ptr.vmem [resolvable:$false] %s1144_s7 }
  0x5d   : > { %410 = vxpose.xlu0.b32.start.end [1/1] (short) (narrow) %v1435_v2, 8  ;;  %s1146_s17 = scalar_lea.vmem %s1145_s7, 32  ;;  %p1147_p8 = scmp.lt.s32.totalorder %s803_s10, %s1145_s7 }
  0x5e   : > { %p1143_p5 = pneg %p1142_p7  ;;  %p1148_p9 = scmp.lt.s32.totalorder %s1146_s17, %s1140_s6 }
  0x60   : > { %p1149_p0 = por %p1148_p9, %p1147_p8 }
  0x62   : > { %p1150_p1 = pnand %p1149_p0, %p1143_p5 }
  0xd9   : > { %v250_v3 = vpop.trf.xlu0 }
  0xda   : > { %961 = vmatmul.mubr.msk.f32.vlgmr.msra.gmra.mrb[0].mxu0 %vm266_vm1, %v250_v3  ;;  %966 = vmatmul.mubr.msk.f32.vlgmr.msra.gmra.mrb[0].mxu1 %vm266_vm1, %v250_v3 }
  0xdb   : > { %974 = vmatpush3.msra.mxu1 %v1435_v2  ;;  %975 = vmatprep.mubr.msk.f32.mxu1 %vm1247_vm0, %v1246_v0 }
  0xdc   : > { %969 = vmatpush3.msra.mxu0 %v1433_v1  ;;  %970 = vmatprep.mubr.msk.f32.mxu0 %vm1247_vm0, %v1246_v0 }
  0xdd   : > { %v426_v4 = vpop.trf.xlu0 }
  0xde   : > { %971 = vmatmul.mubr.msk.f32.vlgmr.msra.gmra.mrb[2].mxu0 %vm266_vm1, %v426_v4  ;;  %976 = vmatmul.mubr.msk.f32.vlgmr.msra.gmra.mrb[2].mxu1 %vm266_vm1, %v426_v4 }
 0x1ad   : > { %v336_v8 = vpop.f32.mrb[0].mxu0  ;;  %v406_v9 = vpop.f32.mrb[0].mxu1 }
 0x1ae   : > { %v590_v10 = vsel %vm589_vm2, %v336_v8, 0.0  ;;  %v962_v11 = vpop.f32.mrb[1].mxu0  ;;  %v967_v12 = vpop.f32.mrb[1].mxu1 }
 0x1af   : > { %v592_v13 = vsel %vm266_vm1, %v590_v10, 0.0 }
 0x1b0   : > { %593 = vadd.xlane.f32.xlu1 %v592_v13  ;;  %v597_v20 = vrot.slane %v592_v13, 4 }
 0x1b1   : > { %v511_v14 = vpop.f32.mrb[2].mxu0  ;;  %v581_v15 = vpop.f32.mrb[2].mxu1 }
 0x1b2   : > { %v591_v16 = vsel %vm589_vm2, %v581_v15, 0.0  ;;  %v972_v17 = vpop.f32.mrb[3].mxu0  ;;  %v977_v18 = vpop.f32.mrb[3].mxu1  ;;  %v598_v22 = vadd.f32 %v597_v20, %v592_v13 }
 0x1b3   : > { %v605_v19 = vsel %vm266_vm1, %v591_v16, 0.0  ;;  %v713_v18 = vsel %vm266_vm1, %v1433_v1, 0.0 }
 0x1b4   : > { %606 = vadd.xlane.f32.xlu1 %v605_v19  ;;  %v610_v21 = vrot.slane %v605_v19, 4  ;;  %v599_v24 = vrot.slane %v598_v22, 2 }
 0x1b6   : > { %v611_v23 = vadd.f32 %v610_v21, %v605_v19  ;;  %v600_v26 = vadd.f32 %v599_v24, %v598_v22  ;;  %v714_v19 = vrot.slane %v713_v18, 4 }
 0x1b8   : > { %v612_v25 = vrot.slane %v611_v23, 2  ;;  %v601_v28 = vrot.slane %v600_v26, 1  ;;  %v715_v20 = vadd.f32 %v714_v19, %v713_v18 }
 0x1ba   : > { %v613_v27 = vadd.f32 %v612_v25, %v611_v23  ;;  %v602_v30 = vadd.f32 %v601_v28, %v600_v26  ;;  %v716_v21 = vrot.slane %v715_v20, 2 }
 0x1bc   : > { %v614_v29 = vrot.slane %v613_v27, 1  ;;  %v603_v32 = vmax.f32 %v602_v30, 1e-24  ;;  %v717_v22 = vadd.f32 %v716_v21, %v715_v20 }
 0x1be   : > { %v615_v31 = vadd.f32 %v614_v29, %v613_v27  ;;  %v718_v23 = vrot.slane %v717_v22, 1 }
 0x1c0   : > { %v616_v34 = vmax.f32 %v615_v31, 1e-24  ;;  %v1485_v24 = vadd.f32 %v718_v23, %v717_v22 }
 0x1c2   : > { %v721_v25 = vsel %vm720_vm3, %v1485_v24, 0.0 }
 0x23d   : > { %v594_v33 = vpop.xlane.xlu1 %593 }
 0x23e   : > { %v595_v35 = vmax.f32 %v594_v33, 1e-24  ;;  %v734_v33 = vsel %vm266_vm1, %v1435_v2, 0.0 }
 0x240   : > { %1048 = vrsqrt.f32 %v595_v35  ;;  %v735_v35 = vrot.slane %v734_v33, 4 }
 0x241   : > { %1050 = vrsqrt.f32 %v603_v32  ;;  %v607_v36 = vpop.xlane.xlu1 %606 }
 0x242   : > { %1052 = vrsqrt.f32 %v616_v34  ;;  %v608_v37 = vmax.f32 %v607_v36, 1e-24 }
 0x244   : > { %1054 = vrsqrt.f32 %v608_v37 }
 0x24a   : > { %v1049_v38 = vpop.eup %1048 }
 0x24b   : > { %v1051_v39 = vpop.eup %1050  ;;  %v620_v40 = vmul.f32 %v1049_v38, %v406_v9  ;;  %v618_v41 = vmul.f32 %v1049_v38, %v336_v8 }
 0x24c   : > { %v1053_v42 = vpop.eup %1052 }
 0x24d   : > { %v621_v43 = vmul.f32 %v1053_v42, %v620_v40  ;;  %v619_v44 = vmul.f32 %v1051_v39, %v618_v41 }
 0x24e   : > { %v1055_v45 = vpop.eup %1054 }
 0x24f   : > { %v633_v46 = vsel %vm266_vm1, %v621_v43, -inf  ;;  %v630_v47 = vsel %vm266_vm1, %v619_v44, -inf  ;;  %v622_v48 = vmul.f32 %v1055_v45, %v511_v14  ;;  %v624_v49 = vmul.f32 %v1055_v45, %v581_v15 }
 0x250   : > { %634 = vmax.xlane.f32.xlu1 %v633_v46  ;;  %631 = vmax.xlane.f32.xlu0 %v630_v47  ;;  %v626_v16 = vsel %vm589_vm2, %v621_v43, 0.0 }
 0x251   : > { %v623_v50 = vmul.f32 %v1051_v39, %v622_v48  ;;  %v625_v51 = vmul.f32 %v1053_v42, %v624_v49  ;;  %v627_v17 = vsel %vm266_vm1, %v626_v16, 0.0  ;;  %v736_v39 = vadd.f32 %v735_v35, %v734_v33 }
 0x253   : > { %v657_v52 = vsel %vm266_vm1, %v623_v50, -inf  ;;  %v660_v53 = vsel %vm266_vm1, %v625_v51, -inf  ;;  %v737_v42 = vrot.slane %v736_v39, 2 }
 0x254   : > { %658 = vmax.xlane.f32.xlu1 %v657_v52 }
 0x255   : > { %v738_v46 = vadd.f32 %v737_v42, %v736_v39 }
 0x257   : > { %v739_v49 = vrot.slane %v738_v46, 1 }
 0x258   : > { %661 = vmax.xlane.f32.xlu1 %v660_v53 }
 0x259   : > { %v740_v52 = vadd.f32 %v739_v49, %v738_v46 }
 0x2dd   : > { %v635_v54 = vpop.xlane.xlu1 %634  ;;  %v632_v55 = vpop.xlane.xlu0 %631 }
 0x2de   : > { %v1467_v56 = vmax.f32 %v632_v55, %v635_v54  ;;  %v741_v54 = vsel %vm720_vm3, %v740_v52, 0.0 }
 0x2e0   : > { %v637_v57 = vsub.f32 %v619_v44, %v1467_v56  ;;  %v643_v58 = vsub.f32 %v621_v43, %v1467_v56  ;;  %v650_v6 = vsub.f32 1.0, %v1467_v56 }
 0x2e1   : > { %v659_v59 = vpop.xlane.xlu1 %658 }
 0x2e2   : > { %v638_v60 = vmul.f32 1.442695, %v637_v57  ;;  %v644_v61 = vmul.f32 1.442695, %v643_v58  ;;  %v651_v7 = vmul.f32 1.442695, %v650_v6 }
 0x2e4   : > { %1056 = vpow2.f32 %v638_v60 }
 0x2e5   : > { %v662_v62 = vpop.xlane.xlu1 %661  ;;  %1058 = vpow2.f32 %v644_v61 }
 0x2e6   : > { %v1471_v63 = vmax.f32 %v659_v59, %v662_v62 }
 0x2e8   : > { %v664_v0 = vsub.f32 %v623_v50, %v1471_v63  ;;  %v670_v3 = vsub.f32 %v625_v51, %v1471_v63  ;;  %v677_v26 = vsub.f32 1.0, %v1471_v63 }
 0x2ea   : > { %v665_v4 = vmul.f32 1.442695, %v664_v0  ;;  %v671_v5 = vmul.f32 1.442695, %v670_v3  ;;  %v678_v27 = vmul.f32 1.442695, %v677_v26 }
 0x2ec   : > { %1060 = vpow2.f32 %v665_v4 }
 0x2ed   : > { %1062 = vpow2.f32 %v671_v5 }
 0x2ee   : > { %v1057_v8 = vpop.eup %1056  ;;  %1064 = vpow2.f32 %v651_v7 }
 0x2ef   : > { %v640_v9 = vsel %vm266_vm1, %v1057_v8, 0.0  ;;  %v1059_v10 = vpop.eup %1058  ;;  %1066 = vpow2.f32 %v678_v27 }
 0x2f0   : > { %641 = vadd.xlane.f32.xlu1 %v640_v9  ;;  %v646_v11 = vsel %vm266_vm1, %v1059_v10, 0.0 }
 0x2f4   : > { %647 = vadd.xlane.f32.xlu1 %v646_v11 }
 0x2f6   : > { %v1061_v12 = vpop.eup %1060 }
 0x2f7   : > { %v667_v13 = vsel %vm266_vm1, %v1061_v12, 0.0  ;;  %v1063_v14 = vpop.eup %1062 }
 0x2f8   : > { %668 = vadd.xlane.f32.xlu1 %v667_v13  ;;  %v673_v15 = vsel %vm266_vm1, %v1063_v14, 0.0  ;;  %v1065_v30 = vpop.eup %1064 }
 0x2f9   : > { %v1067_v37 = vpop.eup %1066 }
 0x2fc   : > { %674 = vadd.xlane.f32.xlu1 %v673_v15 }
 0x300   : > { %628 = vadd.xlane.f32.xlu1 %v627_v17 }
 0x304   : > { %722 = vadd.xlane.f32.xlu1 %v721_v25 }
 0x37d   : > { %v642_v1 = vpop.xlane.xlu1 %641 }
 0x381   : > { %v648_v28 = vpop.xlane.xlu1 %647 }
 0x382   : > { %v649_v29 = vadd.f32 %v648_v28, %v642_v1 }
 0x384   : > { %v653_v31 = vsub.f32 %v649_v29, %v1065_v30 }
 0x385   : > { %v669_v32 = vpop.xlane.xlu1 %668 }
 0x386   : > { %1068 = vlog2.f32 %v653_v31 }
 0x389   : > { %v675_v34 = vpop.xlane.xlu1 %674 }
 0x38a   : > { %v676_v36 = vadd.f32 %v675_v34, %v669_v32 }
 0x38c   : > { %v680_v38 = vsub.f32 %v676_v36, %v1067_v37 }
 0x38d   : > { %v629_v44 = vpop.xlane.xlu1 %628 }
 0x38e   : > { %1070 = vlog2.f32 %v680_v38 }
 0x390   : > { %v1069_v40 = vpop.eup %1068 }
 0x391   : > { %v655_v41 = vmul.f32 0.6931472, %v1069_v40  ;;  %v723_v55 = vpop.xlane.xlu1 %722 }
 0x393   : > { %v656_v43 = vadd.f32 %v655_v41, %v1467_v56  ;;  %v724_v56 = vrot.slane %v723_v55, 4 }
 0x395   : > { %v684_v45 = vsub.f32 %v656_v43, %v629_v44  ;;  %v725_v60 = vadd.f32 %v724_v56, %v723_v55 }
 0x397   : > { %v686_v47 = vsel %vm685_vm4, %v684_v45, 0.0  ;;  %v726_v0 = vrot.slane %v725_v60, 2 }
 0x398   : > { %v1071_v48 = vpop.eup %1070  ;;  %687 = vadd.xlane.f32.xlu1 %v686_v47 }
 0x399   : > { %v682_v2 = vmul.f32 0.6931472, %v1071_v48  ;;  %v727_v10 = vadd.f32 %v726_v0, %v725_v60 }
 0x39b   : > { %v683_v50 = vadd.f32 %v682_v2, %v1471_v63  ;;  %v728_v15 = vrot.slane %v727_v10, 1 }
 0x39d   : > { %v696_v51 = vsub.f32 %v683_v50, %v629_v44  ;;  %v729_v20 = vadd.f32 %v728_v15, %v727_v10 }
 0x39f   : > { %v697_v53 = vsel %vm685_vm4, %v696_v51, 0.0 }
 0x3a0   : > { %698 = vadd.xlane.f32.xlu1 %v697_v53 }
 0x3a4   : > { %742 = vadd.xlane.f32.xlu1 %v741_v54 }
 0x425   : > { %v688_v57 = vpop.xlane.xlu1 %687 }
 0x426   : > { %v689_v58 = vrot.slane %v688_v57, 4 }
 0x428   : > { %v690_v59 = vadd.f32 %v689_v58, %v688_v57 }
 0x42a   : > { %v691_v61 = vrot.slane %v690_v59, 2 }
 0x42c   : > { %v692_v62 = vadd.f32 %v691_v61, %v690_v59 }
 0x42d   : > { %v699_v3 = vpop.xlane.xlu1 %698 }
 0x42e   : > { %v700_v4 = vrot.slane %v699_v3, 4  ;;  %v693_v5 = vrot.slane %v692_v62, 1 }
 0x430   : > { %v701_v63 = vadd.f32 %v700_v4, %v699_v3  ;;  %v694_v8 = vadd.f32 %v693_v5, %v692_v62 }
 0x431   : > { %v743_v9 = vpop.xlane.xlu1 %742 }
 0x432   : > { %v702_v11 = vrot.slane %v701_v63, 2  ;;  %v744_v12 = vrot.slane %v743_v9, 4  ;;  %978 = vpush %v694_v8 }
 0x434   : > { %v745_v13 = vadd.f32 %v744_v12, %v743_v9  ;;  %v703_v14 = vadd.f32 %v702_v11, %v701_v63 }
 0x436   : > { %v746_v16 = vrot.slane %v745_v13, 2  ;;  %v704_v17 = vrot.slane %v703_v14, 1 }
 0x438   : > { %v705_v18 = vadd.f32 %v704_v17, %v703_v14  ;;  %v747_v19 = vadd.f32 %v746_v16, %v745_v13 }
 0x43a   : > { %980 = vpush %v705_v18  ;;  %v748_v21 = vrot.slane %v747_v19, 1 }
 0x43b   : > { %982 = vpush %v729_v20 }
 0x43c   : > { %v749_v22 = vadd.f32 %v748_v21, %v747_v19 }
 0x43e   : > { %984 = vpush %v749_v22 }
 0x463   : > { %s979_s23 = spop %978 }
 0x46b   : > { %s981_s9 = spop %980 }
 0x46c   : > { %s707_s20 = sadd.f32 %s981_s9, %s979_s23  ;;  %s983_s4 = spop %982 }
 0x46d   : > { %v731_v23 = vstv %s983_s4 }
 0x46e   : > { %s710_s22 = smul.f32 0.0625, %s707_s20  ;;  %1072 = vrcp.f32 %v731_v23 }
 0x46f   : > { %s985_s27 = spop %984 }
 0x470   : > { %v711_v25 = vstv %s710_s22  ;;  %v751_v6 = vstv %s985_s27 }
 0x471   : > { %712 = vst [vmem:[%s225_s29] sm:$0x1] %v711_v25  ;;  %1074 = vrcp.f32 %v751_v6 }
 0x478   : > { %v1073_v7 = vpop.eup %1072 }
 0x479   : > { %v733_v26 = vmul.f32 %v1073_v7, %v1485_v24 }
 0x47b   : > { %v1075_v27 = vpop.eup %1074  ;;  %1076 = vlog2.f32 %v733_v26 }
 0x47c   : > { %v753_v1 = vmul.f32 %v1075_v27, %v740_v52 }
 0x47e   : > { %1078 = vlog2.f32 %v753_v1 }
 0x485   : > { %v1077_v28 = vpop.eup %1076 }
 0x486   : > { %v755_v29 = vmul.f32 0.6931472, %v1077_v28 }
 0x488   : > { %v1079_v30 = vpop.eup %1078  ;;  %v756_v31 = vmul.f32 %v755_v29, %v733_v26 }
 0x489   : > { %v769_v32 = vmul.f32 0.6931472, %v1079_v30 }
 0x48a   : > { %v757_v33 = vsel %vm720_vm3, %v756_v31, 0.0 }
 0x48b   : > { %758 = vadd.xlane.f32.xlu0 %v757_v33  ;;  %v770_v34 = vmul.f32 %v769_v32, %v753_v1 }
 0x48d   : > { %v771_v35 = vsel %vm720_vm3, %v770_v34, 0.0 }
 0x48e   : > { %772 = vadd.xlane.f32.xlu1 %v771_v35 }
 0x48f   : > { %1153 = shalt.err (!%p1150_p1)
}
 0x490   : > { %s1154_s23 = scalar_lea.hbm %s1506_s5, 16  ;;  %s1158_s4 = scalar_lea.hbm %s1578_s2, 32 }
 0x491   : > { %p1155_p11 = scmp.ne.s32.totalorder %s1506_s5, %s1154_s23  ;;  %p1159_p4 = scmp.lt.u32.totalorder %s1506_s5, %s1578_s2 }
 0x492   : > { %p1160_p10 = scmp.lt.u32.totalorder %s1158_s4, %s1154_s23  ;;  %p1162_p6 = scmp.lt.u32.totalorder %s1154_s23, %s1506_s5 }
 0x493   : > { %p1156_p12 = pnand %p1155_p11, %p1592_p13 }
 0x494   : > { %p1161_p3 = por %p1160_p10, %p1159_p4 }
 0x495   : > { %p1157_p2 = pneg %p1156_p12 }
 0x496   : > { %p1163_p7 = por %p1162_p6, %p1161_p3 }
 0x498   : > { %p1164_p5 = pnand %p1163_p7, %p1157_p2 }
 0x49a   : > { %1167 = shalt.err (!%p1164_p5)
}
 0x49b   : > { %994 = dma.vmem_to_hbm [thread:$0]  (%p1592_p13), %s803_s10, 16, %s1506_s5, %s786_s19  }
 0x49c   : > { %s231_s10 = scalar_lea.vmem [#allocation8], %s1418_s11  ;;  %s1532_s17 = scalar_lea.hbm %s1579_s3, %s946_s30 }
 0x49d   : > { %s815_s19 = sshll.u32 %s231_s10, 4  ;;  %s790_s23 = scalar_lea.sflag [#allocation9], %s1418_s11  ;;  %s1534_s19 = int_to_ptr.vmem [resolvable:$true] %s815_s19 }
 0x49e   : > { %s1168_s9 = scalar_lea.vmem %s1534_s19, 16  ;;  %s1249_s20 = smov [#allocation8]  }
 0x49f   : > { %p1169_p8 = scmp.ne.s32.totalorder %s1534_s19, %s1168_s9  ;;  %s1172_s16 = sshll.u32 %s1249_s20, 4  ;;  %s1173_s16 = int_to_ptr.vmem [resolvable:$false] %s1172_s16 }
 0x4a0   : > { %s1174_s4 = scalar_lea.vmem %s1173_s16, 32  ;;  %p1175_p1 = scmp.lt.s32.totalorder %s1534_s19, %s1173_s16 }
 0x4a1   : > { %p1170_p9 = pnand %p1169_p8, %p1592_p13  ;;  %p1176_p11 = scmp.lt.s32.totalorder %s1174_s4, %s1168_s9 }
 0x4a3   : > { %p1171_p0 = pneg %p1170_p9  ;;  %p1177_p12 = por %p1176_p11, %p1175_p1 }
 0x4a5   : > { %p1178_p2 = pnand %p1177_p12, %p1171_p0 }
 0x518   : > { %v759_v24 = vpop.xlane.xlu0 %758 }
 0x519   : > { %v760_v36 = vrot.slane %v759_v24, 4 }
 0x51b   : > { %v761_v37 = vadd.f32 %v760_v36, %v759_v24  ;;  %v773_v38 = vpop.xlane.xlu1 %772 }
 0x51c   : > { %v774_v39 = vrot.slane %v773_v38, 4 }
 0x51d   : > { %v762_v40 = vrot.slane %v761_v37, 2 }
 0x51e   : > { %v775_v41 = vadd.f32 %v774_v39, %v773_v38 }
 0x51f   : > { %v763_v42 = vadd.f32 %v762_v40, %v761_v37 }
 0x520   : > { %v776_v43 = vrot.slane %v775_v41, 2 }
 0x521   : > { %v764_v44 = vrot.slane %v763_v42, 1 }
 0x522   : > { %v777_v45 = vadd.f32 %v776_v43, %v775_v41 }
 0x523   : > { %v765_v46 = vadd.f32 %v764_v44, %v763_v42 }
 0x524   : > { %v778_v47 = vrot.slane %v777_v45, 1 }
 0x525   : > { %986 = vpush %v765_v46 }
 0x526   : > { %v779_v48 = vadd.f32 %v778_v47, %v777_v45 }
 0x528   : > { %988 = vpush %v779_v48 }
 0x556   : > { %s987_s29 = spop %986 }
 0x557   : > { %s767_s26 = sadd.f32 2.0794415, %s987_s29 }
 0x559   : > { %s989_s28 = spop %988 }
 0x55a   : > { %s781_s5 = sadd.f32 2.0794415, %s989_s28 }
 0x55c   : > { %s782_s6 = sadd.f32 %s781_s5, %s767_s26 }
 0x55e   : > { %v783_v2 = vstv %s782_s6 }
 0x55f   : > { %784 = vst [vmem:[%s231_s10] sm:$0x1] %v783_v2 }
 0x560   : > { %1181 = shalt.err (!%p1178_p2)
}
 0x561   : > { %s1182_s11 = scalar_lea.hbm %s1532_s17, 16  ;;  %s1186_s27 = scalar_lea.hbm %s1579_s3, 32 }
 0x562   : > { %p1183_p4 = scmp.ne.s32.totalorder %s1532_s17, %s1182_s11  ;;  %p1187_p6 = scmp.lt.u32.totalorder %s1532_s17, %s1579_s3 }
 0x563   : > { %p1188_p7 = scmp.lt.u32.totalorder %s1186_s27, %s1182_s11  ;;  %p1190_p8 = scmp.lt.u32.totalorder %s1182_s11, %s1532_s17 }
 0x564   : > { %p1184_p10 = pnand %p1183_p4, %p1592_p13 }
 0x565   : > { %p1189_p5 = por %p1188_p7, %p1187_p6 }
 0x566   : > { %p1185_p3 = pneg %p1184_p10 }
 0x567   : > { %p1191_p9 = por %p1190_p8, %p1189_p5 }
 0x569   : > { %p1192_p0 = pnand %p1191_p9, %p1185_p3 }
 0x56b   : > { %1195 = shalt.err (!%p1192_p0)
}
 0x56c   : > { %995 = dma.vmem_to_hbm [thread:$0]  (%p1592_p13), %s1534_s19, 16, %s1532_s17, %s790_s23  }
 0x56d PF: > { %s827_s28 = sand.u32 1, %s1230_s12   ;;  %p1593_p1 = scmp.ne.s32.totalorder %s1585_s25, 0 }
 0x56e   : > { %p1594_p11 = scmp.ge.s32.totalorder %s1242_s15, 2  ;;  %s828_s5 = scalar_lea.sflag [#allocation4], %s827_s28 }
 0x570   : > { %p1006_p12 = pnand %p1594_p11, %p1593_p1 }
 0x572   : > { %1221 = dma.done.wait (!%p1006_p12), %s828_s5, 16  }
 0x573   : > { %1223 = vsyncadd (!%p1006_p12), %s828_s5, 4294967280  ;;  %s836_s10 = scalar_lea.sflag [#allocation9], %s827_s28 }
 0x574   : > { %1225 = dma.done.wait (!%p1006_p12), %s836_s10, 16  }
 0x575   : > { %1227 = vsyncadd (!%p1006_p12), %s836_s10, 4294967280  ;;  %p23_p13 = scmp.ge.s32.totalorder %s1295_s18, 4   ;;  %s1595_s12 = smov %s1234_s13 }
 0x576   : > { %s1596_s13 = smov %s1238_s14  ;;  %s1597_s14 = smov %s1307_s21 }
 0x577   : > { %s1598_s15 = smov %s1295_s18  ;;  %25 = sbr.rel (!%p23_p13) target bundleno = 9 (0x9), region = 103 }
 0x57e   :  { %840 = vsyncpa [#allocation3], 1 }
 0x57f   :  { %842 = vsyncpa [#allocation3 + $0x1], 1 }
 0x580   :  { %843 = vsyncpa [#allocation6], 1 }
 0x581   :  { %845 = vsyncpa [#allocation6 + $0x1], 1 }
 0x582   :  { %846 = vsyncpa [#allocation4], 1 }
 0x583   :  { %848 = vsyncpa [#allocation4 + $0x1], 1 }
 0x584   :  { %849 = vsyncpa [#allocation9], 1 }
 0x585   :  { %851 = vsyncpa [#allocation9 + $0x1], 1 }

</bundles_post_ra>
